<compile_context>
chip_gen: v5e
topology: v5e:2x2
jax: 0.10.0
libtpu: 0.0.40
codegen_flags: <defaults>
</compile_context>

<pallas_src>
import functools

import jax
import jax.numpy as jnp
from jax import lax
from jax.experimental import pallas as pl
from jax.experimental.pallas import tpu as pltpu


def _prenorm_conv1x1_kernel(x_ref, w_ref, b_ref, o_ref, *, eps):
    # x_ref: (1, C, THW)  input block — channels on sublanes, pixels on lanes.
    # w_ref: (C_out, C_in) 1x1-conv weight with the LayerNorm gain pre-folded.
    # b_ref: (C_out, 1)    1x1-conv bias.
    # o_ref: (1, C_out, THW) lane-dense output block.
    x = x_ref[0].astype(jnp.float32)                          # (C, THW)

    # --- Single-pass LayerNorm stats over channels (sublane axis) ---
    inv_c = jnp.float32(1.0 / x.shape[0])
    mean = jnp.sum(x, axis=0, keepdims=True) * inv_c          # (1, THW)
    mean_sq = jnp.sum(x * x, axis=0, keepdims=True) * inv_c   # (1, THW)
    var = mean_sq - mean * mean                               # biased variance
    normed = (x - mean) * lax.rsqrt(var + jnp.float32(eps))   # (C, THW)

    # --- fn: 1x1 conv == per-pixel matmul over channels (pixels stay on lanes)
    y = jnp.dot(w_ref[...], normed.astype(w_ref.dtype),
                preferred_element_type=jnp.float32)           # (C_out, THW)
    y = y + b_ref[...]                                        # broadcast (C_out, 1)
    o_ref[0] = y.astype(o_ref.dtype)


def _pick_hw_tile(hw, c, itemsize):
    """Lane tile: multiple of 128 that divides HW, ~2 MiB per (C, THW) tile."""
    if hw % 128 != 0:
        return hw                       # take whole axis as a single block
    budget = 2 << 20                    # ~2 MiB per input tile
    thw = (budget // max(1, c * itemsize)) // 128 * 128
    thw = max(128, min(thw, 2048, hw))
    while hw % thw != 0:                # terminates at 128 since 128 | hw
        thw -= 128
    return thw


def prenorm_conv1x1(x_nchw, g, w, b):
    """PreNorm(dim, Conv2d-1x1).  x_nchw: (N,C,H,W); g: (C,); w: (C_out,C_in); b: (C_out,)."""
    N, C, H, W = x_nchw.shape
    HW = H * W
    eps = 1e-5 if x_nchw.dtype == jnp.float32 else 1e-3
    itemsize = x_nchw.dtype.itemsize

    # Free reshape: NCHW is already channels-on-sublanes / pixels-on-lanes.
    x_ncl = x_nchw.reshape(N, C, HW)

    # Fold LayerNorm gain into the conv weight: W @ diag(g) == W * g[None, :].
    compute_dtype = jnp.bfloat16 if x_nchw.dtype == jnp.bfloat16 else jnp.float32
    w_folded = (w.astype(jnp.float32) * g.astype(jnp.float32)[None, :]).astype(compute_dtype)
    b2 = b.reshape(C, 1).astype(jnp.float32)

    thw = _pick_hw_tile(HW, C, itemsize)
    n_hw = HW // thw

    # VMEM budget: 2x double-buffered input + 2x output tiles + resident weights.
    tile_bytes = C * thw * itemsize
    weight_bytes = w_folded.size * w_folded.dtype.itemsize + b2.size * 4
    vmem_limit = int(min(max(2 * (4 * tile_bytes + weight_bytes), 16 << 20), 48 << 20))

    kernel = functools.partial(_prenorm_conv1x1_kernel, eps=eps)

    out_ncl = pl.pallas_call(
        kernel,
        out_shape=jax.ShapeDtypeStruct((N, C, HW), x_nchw.dtype),
        grid_spec=pltpu.PrefetchScalarGridSpec(
            num_scalar_prefetch=0,
            grid=(N, n_hw),
            in_specs=[
                pl.BlockSpec((1, C, thw), lambda n, t: (n, 0, t)),
                pl.BlockSpec((C, C), lambda n, t: (0, 0)),
                pl.BlockSpec((C, 1), lambda n, t: (0, 0)),
            ],
            out_specs=pl.BlockSpec((1, C, thw), lambda n, t: (n, 0, t)),
        ),
        compiler_params=pltpu.CompilerParams(
            dimension_semantics=("parallel", "parallel"),
            vmem_limit_bytes=vmem_limit,
        ),
    )(x_ncl, w_folded, b2)

    return out_ncl.reshape(N, C, H, W)


def prenorm_reference(x_nchw, g, w, b):
    """Pure-JAX reference mirroring the PyTorch module (f32 math)."""
    eps = 1e-5 if x_nchw.dtype == jnp.float32 else 1e-3
    xf = x_nchw.astype(jnp.float32)
    mean = jnp.mean(xf, axis=1, keepdims=True)
    var = jnp.mean((xf - mean) ** 2, axis=1, keepdims=True)
    normed = (xf - mean) * lax.rsqrt(var + eps) * g.astype(jnp.float32).reshape(1, -1, 1, 1)
    y = jnp.einsum("nchw,oc->nohw", normed, w.astype(jnp.float32),
                   precision=lax.Precision.HIGHEST) + b.astype(jnp.float32).reshape(1, -1, 1, 1)
    return y.astype(x_nchw.dtype)


if __name__ == "__main__":
    key = jax.random.PRNGKey(0)
    k_x, k_w, k_b = jax.random.split(key, 3)

    N, C, H, W = 2, 4, 16, 16
    x = jax.random.normal(k_x, (N, C, H, W), dtype=jnp.float32)

    # LayerNorm gain = ones (matches torch.ones init); conv weight/bias fixed PRNG.
    g = jnp.ones((C,), dtype=jnp.float32)
    w = jax.random.normal(k_w, (C, C), dtype=jnp.float32) * 0.1
    b = jax.random.normal(k_b, (C,), dtype=jnp.float32) * 0.01

    out = jax.block_until_ready(prenorm_conv1x1(x, g, w, b))
    ref = prenorm_reference(x, g, w, b)

    assert out.shape == (N, C, H, W)
    max_err = jnp.max(jnp.abs(out - ref))
    assert jnp.allclose(out, ref, atol=3e-5, rtol=3e-5), f"max abs err = {max_err}"

    print("KERNEL_OK")
</pallas_src>

<mosaic_0001>
module attributes {stable_mosaic.version = 11 : i64} {
  func.func @_prenorm_conv1x1_kernel(%arg0: i32, %arg1: i32, %arg2: memref<1x4x256xf32, #tpu.memory_space<vmem>>, %arg3: memref<4x4xf32, #tpu.memory_space<vmem>>, %arg4: memref<4x1xf32, #tpu.memory_space<vmem>>, %arg5: memref<1x4x256xf32, #tpu.memory_space<vmem>>) attributes {dimension_semantics = [#tpu.dimension_semantics<parallel>, #tpu.dimension_semantics<parallel>], iteration_bounds = array<i64: 2, 1>, scalar_prefetch = 0 : i64, scratch_operands = 0 : i64, tpu.core_type = #tpu.core_type<tc>, window_params = [{transform_indices = @transform_0, window_bounds = array<i64: 1, 4, 256>}, {pipeline_mode = #tpu.pipeline_mode<synchronous>, transform_indices = @transform_1, window_bounds = array<i64: 4, 4>}, {pipeline_mode = #tpu.pipeline_mode<synchronous>, transform_indices = @transform_2, window_bounds = array<i64: 4, 1>}, {transform_indices = @transform_3, window_bounds = array<i64: 1, 4, 256>}]} {
    %c0 = arith.constant 0 : index
    %c0_0 = arith.constant 0 : index
    %c0_1 = arith.constant 0 : index
    %0 = vector.load %arg2[%c0, %c0_0, %c0_1] : memref<1x4x256xf32, #tpu.memory_space<vmem>>, vector<1x4x256xf32>
    %1 = vector.shape_cast %0 : vector<1x4x256xf32> to vector<4x256xf32>
    %cst = arith.constant dense<0.000000e+00> : vector<256xf32>
    %2 = vector.multi_reduction <add>, %1, %cst [0] : vector<4x256xf32> to vector<256xf32>
    %3 = vector.shape_cast %2 : vector<256xf32> to vector<1x256xf32>
    %cst_2 = arith.constant 2.500000e-01 : f32
    %4 = vector.broadcast %cst_2 : f32 to vector<1x256xf32>
    %5 = arith.mulf %3, %4 : vector<1x256xf32>
    %6 = arith.mulf %1, %1 : vector<4x256xf32>
    %cst_3 = arith.constant dense<0.000000e+00> : vector<256xf32>
    %7 = vector.multi_reduction <add>, %6, %cst_3 [0] : vector<4x256xf32> to vector<256xf32>
    %8 = vector.shape_cast %7 : vector<256xf32> to vector<1x256xf32>
    %cst_4 = arith.constant 2.500000e-01 : f32
    %9 = vector.broadcast %cst_4 : f32 to vector<1x256xf32>
    %10 = arith.mulf %8, %9 : vector<1x256xf32>
    %11 = arith.mulf %5, %5 : vector<1x256xf32>
    %12 = arith.subf %10, %11 : vector<1x256xf32>
    %13 = vector.broadcast %5 : vector<1x256xf32> to vector<4x256xf32>
    %14 = arith.subf %1, %13 : vector<4x256xf32>
    %cst_5 = arith.constant 9.99999974E-6 : f32
    %15 = vector.broadcast %cst_5 : f32 to vector<1x256xf32>
    %16 = arith.addf %12, %15 : vector<1x256xf32>
    %17 = math.rsqrt %16 : vector<1x256xf32>
    %18 = vector.broadcast %17 : vector<1x256xf32> to vector<4x256xf32>
    %19 = arith.mulf %14, %18 : vector<4x256xf32>
    %c0_6 = arith.constant 0 : index
    %c0_7 = arith.constant 0 : index
    %20 = vector.load %arg3[%c0_6, %c0_7] : memref<4x4xf32, #tpu.memory_space<vmem>>, vector<4x4xf32>
    %cst_8 = arith.constant dense<0.000000e+00> : vector<4x256xf32>
    %21 = tpu.matmul %20, %19, %cst_8 {dimension_numbers = #tpu.dot_dimension_numbers<[1], [0], [0], [1], [0, 0, 1, 1], [], []>} : vector<4x4xf32>, vector<4x256xf32>, vector<4x256xf32> -> vector<4x256xf32>
    %c0_9 = arith.constant 0 : index
    %c0_10 = arith.constant 0 : index
    %22 = vector.load %arg4[%c0_9, %c0_10] : memref<4x1xf32, #tpu.memory_space<vmem>>, vector<4x1xf32>
    %23 = vector.broadcast %22 : vector<4x1xf32> to vector<4x256xf32>
    %24 = arith.addf %21, %23 : vector<4x256xf32>
    %c0_11 = arith.constant 0 : index
    %c0_12 = arith.constant 0 : index
    %c0_13 = arith.constant 0 : index
    %25 = vector.load %arg5[%c0_11, %c0_12, %c0_13] : memref<1x4x256xf32, #tpu.memory_space<vmem>>, vector<1x4x256xf32>
    %26 = vector.shape_cast %25 : vector<1x4x256xf32> to vector<4x256xf32>
    %27 = vector.shape_cast %24 : vector<4x256xf32> to vector<1x4x256xf32>
    tpu.vector_store %arg5[%c0_11, %c0_12, %c0_13], %27 {strides = array<i32>} : memref<1x4x256xf32, #tpu.memory_space<vmem>>, vector<1x4x256xf32>,
    return
  }
  func.func @transform_0(%arg0: i32, %arg1: i32) -> (i32, i32, i32) {
    %c0_i32 = arith.constant 0 : i32
    %c0_i32_0 = arith.constant 0 : i32
    return %arg0, %c0_i32, %arg1 : i32, i32, i32
  }
  func.func @transform_1(%arg0: i32, %arg1: i32) -> (i32, i32) {
    %c0_i32 = arith.constant 0 : i32
    %c0_i32_0 = arith.constant 0 : i32
    %c0_i32_1 = arith.constant 0 : i32
    return %c0_i32, %c0_i32_0 : i32, i32
  }
  func.func @transform_2(%arg0: i32, %arg1: i32) -> (i32, i32) {
    %c0_i32 = arith.constant 0 : i32
    %c0_i32_0 = arith.constant 0 : i32
    %c0_i32_1 = arith.constant 0 : i32
    return %c0_i32, %c0_i32_0 : i32, i32
  }
  func.func @transform_3(%arg0: i32, %arg1: i32) -> (i32, i32, i32) {
    %c0_i32 = arith.constant 0 : i32
    %c0_i32_0 = arith.constant 0 : i32
    return %arg0, %c0_i32, %arg1 : i32, i32, i32
  }
}

</mosaic_0001>

<bundles_post_ra>
// kernel: tpu_custom_call.1
= control target key start
LH: loop header
LB: loop body
LE: loop exit
PB: predicated region body
PF: predicated region fallthrough
CT: control target
= control target key end

     0   :  { %8 = vsyncpa [#allocation3], 0  ;;  %s831_s0 = inlined_call_operand.hbm [shape: f32[2,4,256], index: 0, kind: input, shape index: {}]   ;;  %s832_s1 = inlined_call_operand.vmem [shape: f32[4,4], index: 1, kind: input, shape index: {}]   ;;  %s833_s2 = inlined_call_operand.vmem [shape: f32[4,1], index: 2, kind: input, shape index: {}]   ;;  %s834_s3 = inlined_call_operand.hbm [shape: f32[2,4,256], index: 3, kind: output, shape index: {}]  }
   0x1   :  { %10 = vsyncpa [#allocation3 + $0x1], 0 }
   0x2   :  { %11 = vsyncpa [#allocation4], 0 }
   0x3   :  { %13 = vsyncpa [#allocation4 + $0x1], 0  ;;  %s686_s12 = smov 0   ;;  %s688_s13 = smov 0  }
   0x4   :  { %s690_s14 = smov 0   ;;  %s692_s15 = smov 0  }
   0x5   :  { %s694_s16 = smov 0   ;;  %s696_s17 = smov 0  }
   0x6 LB: > { %s462_s18 = sadd.s32 4294967295, %s663_s17   ;;  %s463_s19 = sadd.s32 4294967294, %s663_s17   ;;  %s663_s17 = sphi %s696_s17, %s19_s17   ;;  %s659_s16 = sphi %s694_s16, %s843_s16   ;;  %s655_s15 = sphi %s692_s15, %s842_s15   ;;  %s651_s14 = sphi %s690_s14, %s841_s14   ;;  %s647_s13 = sphi %s688_s13, %s840_s13   ;;  %s643_s12 = sphi %s686_s12, %s839_s12  }
   0x7   : > { %s31_s20 = sadd.s32 1, %s659_s16  ;;  %s40_s21 = sadd.s32 1, %s651_s14 }
   0x8   : > { %p33_p0 = scmp.ge.s32.totalorder %s31_s20, 2  ;;  %p47_p1 = scmp.ne.s32.totalorder %s651_s14, %s647_s13 }
   0x9   : > { %p48_p2 = scmp.eq.s32.totalorder %s663_s17, 0  ;;  %p53_p3 = scmp.ne.s32.totalorder %s647_s13, %s643_s12 }
   0xa   : > { %s845_s20 = smov (%p33_p0, %s31_s20), 0  ;;  %p54_p5 = scmp.eq.s32.totalorder %s462_s18, 0 }
   0xb   : > { %p727_p4 = por %p48_p2, %p47_p1  ;;  %s35_s23 = ssub.s32 %s659_s16, %s845_s20 }
   0xc   : > { %p121_p6 = scmp.eq.s32.totalorder %s462_s18, 1  ;;  %p38_p7 = scmp.eq.s32.totalorder %s35_s23, 0 }
   0xd   : > { %p733_p8 = por %p54_p5, %p53_p3  ;;  %p127_p10 = scmp.eq.s32.totalorder %s463_s19, 1 }
   0xe   : > { %p737_p9 = por %p121_p6, %p47_p1  ;;  %p465_p12 = scmp.ge.s32.totalorder %s663_s17, 2 }
   0xf   : > { %s742_s26 = scalar_select %p38_p7, %s651_s14, %s40_s21  }
  0x10   : > { %p744_p11 = por %p127_p10, %p53_p3  ;;  %p495_p13 = scmp.lt.s32.totalorder %s663_s17, 2 }
  0x11   : > { %s153_s28 = sand.u32 1, %s651_s14   ;;  %s481_s30 = sshll.u32 %s659_s16, 3 }
  0x12   : > { %s466_s29 = sshll.u32 %s153_s28, 3  ;;  %s164_s6 = scalar_lea.hbm %s831_s0, %s481_s30 }
  0x13   : > { %s157_s7 = scalar_lea.vmem [#allocation2], %s466_s29  ;;  %s166_s9 = sshll.u32 %s164_s6, 4  ;;  %s167_s9 = int_to_ptr.hbm [resolvable:$true] %s166_s9 }
  0x14   : > { %s168_s8 = sshll.u32 %s157_s7, 4  ;;  %p488_p0 = pnand %p495_p13, %p727_p4  ;;  %s169_s8 = int_to_ptr.vmem [resolvable:$true] %s168_s8 }
  0x15   : > { %p469_p1 = scmp.ge.s32.totalorder %s663_s17, 1  ;;  %p173_p2 = scmp.lt.s32.totalorder %s663_s17, 3 }
  0x16   : > { %s154_s10 = scalar_lea.sflag [#allocation3], %s153_s28 }
  0x17   : > { %490 = dma.hbm_to_vmem [thread:$0]  (!%p488_p0), %s167_s9, 128, %s169_s8, %s154_s10  }
  0x18   : > { %p174_p3 = pnand %p469_p1, %p173_p2 }
  0x19   : > { %s760_s11 = sand.u32 (!%p174_p3), 1, %s647_s13  }
  0x1a   : > { %177 = sbr.rel (%p174_p3) target bundleno = 235 (0xeb), region = 32  ;;  %s470_s18 = sshll.u32 (!%p174_p3), %s760_s11, 3 }
  0x1b   : > { %s180_s19 = scalar_lea.sflag (!%p174_p3), [#allocation3], %s760_s11  ;;  %s183_s21 = scalar_lea.vmem (!%p174_p3), [#allocation2], %s470_s18 }
  0x1f   : > { %634 = dma.done.wait (%p733_p8), %s180_s19, 128  }
  0x20   : > { %636 = vsyncadd (%p733_p8), %s180_s19, 4294967168  ;;  %v770_v0 = vld [vmem:[%s183_s21] sm:$0xff]  ;;  %vm216_vm0 = vcmask 1043456   ;;  %v295_v44 = vld [vmem:[%s833_s2] sm:$0xf]  ;;  %v665_v45 = vmov 0  }
  0x21   : > { %211 = vst [vmem:[#allocation1] ss:$2 sm:$0xff] %v770_v0  ;;  %v233_v1 = vmul.f32 %v770_v0, %v770_v0  ;;  %546 = vset.pattern.permute.xlu0 %v665_v45  ;;  %vm305_vm7 = vcmask 31744   ;;  %s482_s29 = sshll.u32 %s655_s15, 3  ;;  %s206_s6 = scalar_lea.vmem [#allocation5], %s470_s18 }
  0x22   : > { %298 = vperm.xlu0 %546, %v295_v44   ;;  %s373_s5 = scalar_lea.hbm %s834_s3, %s482_s29  ;;  %s375_s7 = sshll.u32 %s206_s6, 4  ;;  %s376_s7 = int_to_ptr.vmem [resolvable:$true] %s375_s7 }
  0x23   : > { %s377_s8 = sshll.u32 %s373_s5, 4  ;;  %s360_s15 = scalar_lea.sflag [#allocation4], %s760_s11  ;;  %s378_s8 = int_to_ptr.hbm [resolvable:$true] %s377_s8 }
  0x24   : > { %s595_s9 = sshra.s32 %s378_s8, 4  ;;  %s601_s18 = scalar_lea.hbm %s834_s3, 16  ;;  %s596_s9 = int_to_ptr.hbm [resolvable:$true] %s595_s9 }
  0x25   : > { %s597_s10 = scalar_lea.hbm %s596_s9, 8  ;;  %p602_p7 = scmp.lt.s32.totalorder %s596_s9, %s834_s3 }
  0x26   : > { %p598_p4 = scmp.ne.s32.totalorder %s596_s9, %s597_s10  ;;  %p603_p8 = scmp.lt.s32.totalorder %s601_s18, %s597_s10 }
  0x28   : > { %v212_v2 = vld.sshfl [vmem:[#allocation1] sm:$0xff pattern:$0x75316420]  ;;  %v213_v3 = vld.sshfl [vmem:[#allocation1 + $0x8] sm:$0xff pattern:$0x75316420]  ;;  %p599_p5 = pnand %p598_p4, %p737_p9  ;;  %p604_p10 = por %p603_p8, %p602_p7 }
  0x29   : > { %v217_v4 = vsel %vm216_vm0, %v212_v2, 0.0  ;;  %v224_v5 = vsel %vm216_vm0, %v213_v3, 0.0  ;;  %235 = vst [vmem:[#allocation1] ss:$2 sm:$0xff] %v233_v1  ;;  %v294_v3 = vld [vmem:[%s832_s1] sm:$0xf] }
  0x2a   : > { %v218_v6 = vrot.slane %v217_v4, 4  ;;  %v225_v7 = vrot.slane %v224_v5, 4  ;;  %p600_p6 = pneg %p599_p5 }
  0x2c   : > { %v219_v8 = vadd.f32 %v218_v6, %v217_v4  ;;  %v226_v9 = vadd.f32 %v225_v7, %v224_v5  ;;  %p605_p13 = pnand %p604_p10, %p600_p6 }
  0x2e   : > { %v220_v10 = vrot.slane %v219_v8, 2  ;;  %v227_v11 = vrot.slane %v226_v9, 2 }
  0x30   : > { %v221_v12 = vadd.f32 %v220_v10, %v219_v8  ;;  %v228_v13 = vadd.f32 %v227_v11, %v226_v9  ;;  %v236_v14 = vld.sshfl [vmem:[#allocation1] sm:$0xff pattern:$0x75316420]  ;;  %v237_v15 = vld.sshfl [vmem:[#allocation1 + $0x8] sm:$0xff pattern:$0x75316420] }
  0x31   : > { %v240_v16 = vsel %vm216_vm0, %v236_v14, 0.0  ;;  %v247_v17 = vsel %vm216_vm0, %v237_v15, 0.0 }
  0x32   : > { %v222_v18 = vrot.slane %v221_v12, 1  ;;  %v229_v19 = vrot.slane %v228_v13, 1  ;;  %v241_v20 = vrot.slane %v240_v16, 4  ;;  %v248_v21 = vrot.slane %v247_v17, 4 }
  0x34   : > { %v223_v22 = vadd.f32 %v222_v18, %v221_v12  ;;  %v230_v23 = vadd.f32 %v229_v19, %v228_v13  ;;  %v242_v24 = vadd.f32 %v241_v20, %v240_v16  ;;  %v249_v25 = vadd.f32 %v248_v21, %v247_v17 }
  0x36   : > { %v243_v26 = vrot.slane %v242_v24, 2  ;;  %v250_v27 = vrot.slane %v249_v25, 2  ;;  %v231_v28 = vmul.f32 0.25, %v223_v22  ;;  %v232_v29 = vmul.f32 0.25, %v230_v23 }
  0x38   : > { %v244_v30 = vadd.f32 %v243_v26, %v242_v24  ;;  %v251_v31 = vadd.f32 %v250_v27, %v249_v25  ;;  %v256_v36 = vmul.f32 %v231_v28, %v231_v28  ;;  %v257_v37 = vmul.f32 %v232_v29, %v232_v29 }
  0x39   : > { %v262_v52 = vrot.slane %v232_v29, 4 }
  0x3a   : > { %v245_v32 = vrot.slane %v244_v30, 1  ;;  %v252_v33 = vrot.slane %v251_v31, 1 }
  0x3b   : > { %v263_v57 = vsel %vm216_vm0, %v231_v28, %v262_v52 }
  0x3c   : > { %v246_v34 = vadd.f32 %v245_v32, %v244_v30  ;;  %v253_v35 = vadd.f32 %v252_v33, %v251_v31  ;;  %v265_v60 = vsub.f32 %v770_v0, %v263_v57 }
  0x3e   : > { %v254_v38 = vmul.f32 0.25, %v246_v34  ;;  %v255_v39 = vmul.f32 0.25, %v253_v35 }
  0x40   : > { %v258_v40 = vsub.f32 %v254_v38, %v256_v36  ;;  %v259_v41 = vsub.f32 %v255_v39, %v257_v37 }
  0x42   : > { %v266_v42 = vadd.f32 1e-05, %v258_v40  ;;  %v267_v43 = vadd.f32 1e-05, %v259_v41 }
  0x44   : > { %547 = vrsqrt.f32 %v266_v42  ;;  %vm274_vm1 = vweird.f32 %v266_v42  ;;  %vm284_vm3 = vweird.f32 %v267_v43 }
  0x45   : > { %549 = vrsqrt.f32 %v267_v43 }
  0x4a   : > { %v548_v46 = vpop.eup %547 }
  0x4b   : > { %v550_v47 = vpop.eup %549  ;;  %v269_v48 = vmul.f32 %v548_v46, %v266_v42  ;;  %vm275_vm2 = vweird.f32 %v548_v46 }
  0x4c   : > { %v279_v49 = vmul.f32 %v550_v47, %v267_v43  ;;  %vm285_vm4 = vweird.f32 %v550_v47  ;;  %vm276_vm5 = vmor %vm274_vm1, %vm275_vm2 }
  0x4d   : > { %v270_v50 = vmul.f32 %v548_v46, %v269_v48  ;;  %vm286_vm6 = vmor %vm284_vm3, %vm285_vm4 }
  0x4e   : > { %v280_v51 = vmul.f32 %v550_v47, %v279_v49 }
  0x4f   : > { %v271_v53 = vmul.f32 0.5, %v270_v50 }
  0x50   : > { %v281_v54 = vmul.f32 0.5, %v280_v51 }
  0x51   : > { %v272_v55 = vsub.f32 1.5, %v271_v53 }
  0x52   : > { %v282_v56 = vsub.f32 1.5, %v281_v54 }
  0x53   : > { %v273_v58 = vmul.f32 %v548_v46, %v272_v55 }
  0x54   : > { %v283_v59 = vmul.f32 %v550_v47, %v282_v56 }
  0x55   : > { %v277_v61 = vsel %vm276_vm5, %v548_v46, %v273_v58 }
  0x56   : > { %v287_v62 = vsel %vm286_vm6, %v550_v47, %v283_v59 }
  0x57   : > { %v290_v63 = vrot.slane %v287_v62, 4 }
  0x59   : > { %v291_v1 = vsel %vm216_vm0, %v277_v61, %v290_v63 }
  0x5a   : > { %v293_v2 = vmul.f32 %v291_v1, %v265_v60 }
  0x5c   : > { %302 = vst [vmem:[#allocation1] ss:$2 sm:$0xff] %v293_v2 }
  0x63   : > { %v303_v4 = vld.sshfl [vmem:[#allocation1] sm:$0xff pattern:$0x75316420]  ;;  %v304_v5 = vld.sshfl [vmem:[#allocation1 + $0x8] sm:$0xff pattern:$0x75316420] }
  0x64   : > { %472 = vmatpush.msk.msra.mxu0 %vm216_vm0, %v303_v4  ;;  %474 = vmatpush.msk.msra.mxu1 %vm216_vm0, %v304_v5 }
  0x65   : > { %473 = vmatmul.msk.f32.vlgmr.msra.gmra.mxu0 %vm305_vm7, %v294_v3  ;;  %475 = vmatmul.msk.f32.vlgmr.msra.gmra.mxu1 %vm305_vm7, %v294_v3 }
  0x94   : > { %v299_v0 = vpop.permute.xlu0 %298 }
  0xe2   : > { %v330_v6 = vpop.f32.mrf.mxu0  ;;  %v350_v7 = vpop.f32.mrf.mxu1 }
  0xe3   : > { %v351_v8 = vadd.f32 %v350_v7, %v299_v0  ;;  %v331_v9 = vadd.f32 %v330_v6, %v299_v0 }
  0xe5   : > { %v355_v10 = vrot.slane %v351_v8, 4 }
  0xe7   : > { %v356_v11 = vsel %vm216_vm0, %v331_v9, %v355_v10 }
  0xe8   : > { %358 = vst [vmem:[%s206_s6] sm:$0xff] %v356_v11 }
  0xe9   : > { %608 = shalt.err (!%p605_p13)
}
  0xea   : > { %485 = dma.vmem_to_hbm [thread:$0]  (%p737_p9), %s376_s7, 128, %s378_s8, %s360_s15  }
  0xeb PF: > { %s389_s11 = sand.u32 1, %s643_s12   ;;  %p492_p0 = pnand %p465_p12, %p744_p11 }
  0xec   : > { %s390_s24 = scalar_lea.sflag [#allocation4], %s389_s11 }
  0xed   : > { %p493_p1 = pneg %p492_p0 }
  0xef   : > { %638 = dma.done.wait (%p493_p1), %s390_s24, 128  }
  0xf0   : > { %640 = vsyncadd (%p493_p1), %s390_s24, 4294967168  ;;  %s19_s17 = sadd.s32 1, %s663_s17   ;;  %s839_s12 = smov %s647_s13 }
  0xf1   : > { %p16_p2 = scmp.ge.s32.totalorder %s19_s17, 4   ;;  %s840_s13 = smov %s651_s14 }
  0xf2   : > { %s841_s14 = smov %s742_s26  ;;  %s842_s15 = smov %s659_s16 }
  0xf3   : > { %s843_s16 = smov %s845_s20  ;;  %18 = sbr.rel (!%p16_p2) target bundleno = 6 (0x6), region = 77 }
  0xf8   :  { %396 = vsyncpa [#allocation3], 1 }
  0xf9   :  { %398 = vsyncpa [#allocation3 + $0x1], 1 }
  0xfa   :  { %399 = vsyncpa [#allocation4], 1 }
  0xfb   :  { %401 = vsyncpa [#allocation4 + $0x1], 1 }

</bundles_post_ra>
